<compile_context>
chip_gen: v6e
topology: v6e:2x2x1
jax: 0.10.0
libtpu: 0.0.40
codegen_flags: <defaults>
</compile_context>

<pallas_src>
import jax
import jax.numpy as jnp
from jax.experimental import pallas as pl
from jax.experimental.pallas import tpu as pltpu


def _round_up(x, m):
    return (x + m - 1) // m * m


# ---------------------------------------------------------------------------
# In-kernel math
# ---------------------------------------------------------------------------
def _erf_f32(x):
    """float32 erf (Abramowitz & Stegun 7.1.26, |err| < 1.5e-7).

    Only ops guaranteed to lower in Mosaic (exp, mul/add, where, reciprocal).
    The divide runs on the EUP slot via pl.reciprocal(approx=True).
    """
    a1 = 0.254829592
    a2 = -0.284496736
    a3 = 1.421413741
    a4 = -1.453152027
    a5 = 1.061405429
    p = 0.3275911
    s = jnp.where(x >= 0.0, 1.0, -1.0)
    z = jnp.abs(x)
    t = pl.reciprocal(1.0 + p * z, approx=True)          # EUP, not VALU
    poly = ((((a5 * t + a4) * t + a3) * t + a2) * t + a1) * t
    return s * (1.0 - poly * jnp.exp(-z * z))


def _gelu_exact(x):
    # nn.GELU() default (erf-based), evaluated in fp32.
    return 0.5 * x * (1.0 + _erf_f32(x * 0.7071067811865476))


def _ffn_kernel(x_ref, w1_ref, b1_ref, w2_ref, b2_ref, o_ref, acc_ref):
    """One (row-tile, hidden-chunk) grid step.

    x_ref:  (tm, Dp)   bf16   activation row tile (constant across k)
    w1_ref: (Dp, tk)   bf16   W1 hidden-chunk
    b1_ref: (1, tk)    f32
    w2_ref: (tk, Dp)   bf16   W2 hidden-chunk
    b2_ref: (1, Dp)    f32
    o_ref:  (tm, Dp)   f32    output row tile (written on last k)
    acc_ref:(tm, Dp)   f32    VMEM accumulator
    """
    k = pl.program_id(1)

    @pl.when(k == 0)
    def _init():
        acc_ref[...] = jnp.zeros_like(acc_ref)

    # First matmul chunk: (tm, Dp) x (Dp, tk) -> fp32
    h = jnp.dot(x_ref[...], w1_ref[...], preferred_element_type=jnp.float32)
    # Fused bias + exact GELU (elementwise over hidden -> exact per chunk).
    h = _gelu_exact(h + b1_ref[...])
    # Second matmul chunk accumulates into the fp32 scratch.
    acc_ref[...] += jnp.dot(h.astype(jnp.bfloat16), w2_ref[...],
                            preferred_element_type=jnp.float32)

    @pl.when(k == pl.num_programs(1) - 1)
    def _finalize():
        o_ref[...] = (acc_ref[...] + b2_ref[...]).astype(o_ref.dtype)


# ---------------------------------------------------------------------------
# Tiling heuristics
# ---------------------------------------------------------------------------
def _choose_tm(m):
    # Single tile for small M (the grid is a sequential loop on one TC for
    # v5e/v6e, so splitting only adds ~0.35 us/step); otherwise snap to the
    # 256-high MXU (also a multiple of v5e's 128).
    if m <= 256:
        return max(8, _round_up(m, 8))
    return 256


def _choose_tk(dim_p, hidden_p, budget_bytes=8 * 1024 * 1024):
    # Keep each streamed bf16 weight tile (W1 slice + W2 slice are the same
    # size) under ~budget so double-buffering stays well inside VMEM.
    if 4 * dim_p * hidden_p <= budget_bytes:       # both full weights are small
        return hidden_p
    for cand in range(hidden_p - 128, 127, -128):
        if hidden_p % cand == 0 and 4 * dim_p * cand <= budget_bytes:
            return cand
    return 128                                      # always divides (hidden_p % 128 == 0)


def _vmem_limit_bytes():
    # Explicit scoped-VMEM limit: defaults are 16/32 MiB, far below physical.
    # Never exceed physical (v7x has only 64 MiB/TC); unknown chips keep the
    # compiler default.
    try:
        kind = jax.devices()[0].device_kind.lower()
    except Exception:
        return None
    if "v5" in kind or "v6" in kind:
        return 100 * 1024 * 1024
    if "v7" in kind or "7x" in kind:
        return 50 * 1024 * 1024
    return None


# ---------------------------------------------------------------------------
# Wrapper
# ---------------------------------------------------------------------------
def feedforward_forward(params, x):
    """x: (..., dim) -> (..., dim).  Dropout = identity (inference)."""
    w1, b1, w2, b2 = params['w1'], params['b1'], params['w2'], params['b2']
    dim_p, hidden_p = w1.shape
    dim = x.shape[-1]
    lead = x.shape[:-1]

    # bf16 activations: halves the per-tile activation DMA, MXU-ready operands.
    x2 = x.reshape(-1, dim).astype(jnp.bfloat16)
    m = x2.shape[0]
    tm = _choose_tm(m)
    mp = _round_up(m, tm)
    if mp != m or dim_p != dim:                     # pad rows / lane axis only when ragged
        x2 = jnp.pad(x2, ((0, mp - m), (0, dim_p - dim)))

    tk = _choose_tk(dim_p, hidden_p)
    grid = (mp // tm, hidden_p // tk)

    cost = pl.CostEstimate(
        flops=4 * mp * dim_p * hidden_p,                     # two matmuls
        transcendentals=2 * mp * hidden_p,                   # exp + reciprocal per hidden elem
        bytes_accessed=(mp * dim_p * 2                       # activations (bf16)
                        + 4 * dim_p * hidden_p               # W1 + W2 (bf16)
                        + 4 * (hidden_p + dim_p)             # biases (f32)
                        + mp * dim_p * 4),                   # output (f32)
    )

    out = pl.pallas_call(
        _ffn_kernel,
        out_shape=jax.ShapeDtypeStruct((mp, dim_p), jnp.float32),
        grid=grid,
        in_specs=[
            pl.BlockSpec((tm, dim_p), lambda i, k: (i, 0)),      # activation row tile
            pl.BlockSpec((dim_p, tk), lambda i, k: (0, k)),      # W1 hidden-chunk
            pl.BlockSpec((1, tk), lambda i, k: (0, k)),          # b1 chunk
            pl.BlockSpec((tk, dim_p), lambda i, k: (k, 0)),      # W2 hidden-chunk
            pl.BlockSpec((1, dim_p), lambda i, k: (0, 0)),       # b2 (grid-invariant)
        ],
        out_specs=pl.BlockSpec((tm, dim_p), lambda i, k: (i, 0)),
        scratch_shapes=[pltpu.VMEM((tm, dim_p), jnp.float32)],   # fp32 accumulator
        compiler_params=pltpu.CompilerParams(
            dimension_semantics=("parallel", "arbitrary"),
            vmem_limit_bytes=_vmem_limit_bytes()),
        cost_estimate=cost,
    )(x2, w1, b1, w2, b2)

    out = out[:m, :dim]
    return out.reshape(*lead, dim).astype(x.dtype)


# ---------------------------------------------------------------------------
# Parameters (PyTorch nn.Linear-style init), pre-transposed to (in, out),
# bf16-cast and lane-padded to multiples of 128 ONCE at setup.
# ---------------------------------------------------------------------------
def init_ffn_params(key, dim, hidden_dim):
    k1, k2, k3, k4 = jax.random.split(key, 4)
    bound1 = 1.0 / (dim ** 0.5)
    bound2 = 1.0 / (hidden_dim ** 0.5)
    w1_pt = jax.random.uniform(k1, (hidden_dim, dim), jnp.float32, -bound1, bound1)
    b1 = jax.random.uniform(k2, (hidden_dim,), jnp.float32, -bound1, bound1)
    w2_pt = jax.random.uniform(k3, (dim, hidden_dim), jnp.float32, -bound2, bound2)
    b2 = jax.random.uniform(k4, (dim,), jnp.float32, -bound2, bound2)

    dim_p = _round_up(dim, 128)          # lane-dense output / MXU-friendly N
    hidden_p = _round_up(hidden_dim, 128)
    pd, ph = dim_p - dim, hidden_p - hidden_dim

    params = {
        # zero-padding keeps results exact: padded hidden rows of W2 are zero
        # and padded output columns are sliced off in the wrapper.
        'w1': jnp.pad(jnp.swapaxes(w1_pt, 0, 1), ((0, pd), (0, ph))).astype(jnp.bfloat16),
        'b1': jnp.pad(b1, (0, ph)).reshape(1, hidden_p),            # fp32
        'w2': jnp.pad(jnp.swapaxes(w2_pt, 0, 1), ((0, ph), (0, pd))).astype(jnp.bfloat16),
        'b2': jnp.pad(b2, (0, pd)).reshape(1, dim_p),                # fp32
    }
    ref = {'w1': w1_pt, 'b1': b1, 'w2': w2_pt, 'b2': b2}
    return params, ref


def feedforward_reference(ref, x):
    h = x @ ref['w1'].T + ref['b1']
    h = jax.nn.gelu(h, approximate=False)
    return h @ ref['w2'].T + ref['b2']
    # Dropout(p=0.0) is the identity; nothing to model.


if __name__ == "__main__":
    B, S, DIM, HIDDEN = 2, 8, 32, 128
    key = jax.random.PRNGKey(0)
    pkey, xkey = jax.random.split(key)
    params, ref = init_ffn_params(pkey, DIM, HIDDEN)
    x = jax.random.normal(xkey, (B, S, DIM), dtype=jnp.float32)

    fwd = jax.jit(feedforward_forward)
    y = jax.block_until_ready(fwd(params, x))
    assert y.shape == (B, S, DIM), y.shape
    assert bool(jnp.all(jnp.isfinite(y)))

    y_ref = feedforward_reference(ref, x)
    err = float(jnp.max(jnp.abs(y - y_ref)))
    assert err < 5e-2, f"max abs err {err}"
    print("KERNEL_OK")
</pallas_src>

<mosaic_0001>
module attributes {stable_mosaic.version = 11 : i64} {
  func.func @_ffn_kernel(%arg0: i32, %arg1: i32, %arg2: memref<16x128xbf16, #tpu.memory_space<vmem>>, %arg3: memref<128x128xbf16, #tpu.memory_space<vmem>>, %arg4: memref<1x128xf32, #tpu.memory_space<vmem>>, %arg5: memref<128x128xbf16, #tpu.memory_space<vmem>>, %arg6: memref<1x128xf32, #tpu.memory_space<vmem>>, %arg7: memref<16x128xf32, #tpu.memory_space<vmem>>, %arg8: memref<16x128xf32, #tpu.memory_space<vmem>>) attributes {dimension_semantics = [#tpu.dimension_semantics<parallel>, #tpu.dimension_semantics<arbitrary>], iteration_bounds = array<i64: 1, 1>, scalar_prefetch = 0 : i64, scratch_operands = 1 : i64, tpu.core_type = #tpu.core_type<tc>, window_params = [{transform_indices = @transform_0, window_bounds = array<i64: 16, 128>}, {transform_indices = @transform_1, window_bounds = array<i64: 128, 128>}, {transform_indices = @transform_2, window_bounds = array<i64: 1, 128>}, {transform_indices = @transform_3, window_bounds = array<i64: 128, 128>}, {pipeline_mode = #tpu.pipeline_mode<synchronous>, transform_indices = @transform_4, window_bounds = array<i64: 1, 128>}, {transform_indices = @transform_5, window_bounds = array<i64: 16, 128>}]} {
    %c0_i32 = arith.constant 0 : i32
    %0 = arith.cmpi eq, %arg1, %c0_i32 : i32
    %1 = arith.extui %0 : i1 to i32
    %c0_i32_0 = arith.constant 0 : i32
    %2 = arith.cmpi ne, %1, %c0_i32_0 : i32
    scf.if %2 {
      %cst_30 = arith.constant 0.000000e+00 : f32
      %58 = vector.broadcast %cst_30 : f32 to vector<16x128xf32>
      %c0_31 = arith.constant 0 : index
      %c0_32 = arith.constant 0 : index
      %59 = vector.load %arg8[%c0_31, %c0_32] : memref<16x128xf32, #tpu.memory_space<vmem>>, vector<16x128xf32>
      tpu.vector_store %arg8[%c0_31, %c0_32], %58 {strides = array<i32>} : memref<16x128xf32, #tpu.memory_space<vmem>>, vector<16x128xf32>,
    } else {
    }
    %c0 = arith.constant 0 : index
    %c0_1 = arith.constant 0 : index
    %3 = vector.load %arg2[%c0, %c0_1] : memref<16x128xbf16, #tpu.memory_space<vmem>>, vector<16x128xbf16>
    %c0_2 = arith.constant 0 : index
    %c0_3 = arith.constant 0 : index
    %4 = vector.load %arg3[%c0_2, %c0_3] : memref<128x128xbf16, #tpu.memory_space<vmem>>, vector<128x128xbf16>
    %cst = arith.constant dense<0.000000e+00> : vector<16x128xf32>
    %5 = tpu.matmul %3, %4, %cst {dimension_numbers = #tpu.dot_dimension_numbers<[1], [0], [0], [1], [0, 0, 1, 1], [], []>} : vector<16x128xbf16>, vector<128x128xbf16>, vector<16x128xf32> -> vector<16x128xf32>
    %c0_4 = arith.constant 0 : index
    %c0_5 = arith.constant 0 : index
    %6 = vector.load %arg4[%c0_4, %c0_5] : memref<1x128xf32, #tpu.memory_space<vmem>>, vector<1x128xf32>
    %7 = vector.broadcast %6 : vector<1x128xf32> to vector<16x128xf32>
    %8 = arith.addf %5, %7 : vector<16x128xf32>
    %cst_6 = arith.constant 5.000000e-01 : f32
    %9 = vector.broadcast %cst_6 : f32 to vector<16x128xf32>
    %10 = arith.mulf %9, %8 : vector<16x128xf32>
    %cst_7 = arith.constant 0.707106769 : f32
    %11 = vector.broadcast %cst_7 : f32 to vector<16x128xf32>
    %12 = arith.mulf %8, %11 : vector<16x128xf32>
    %cst_8 = arith.constant 0.000000e+00 : f32
    %13 = vector.broadcast %cst_8 : f32 to vector<16x128xf32>
    %14 = arith.cmpf oge, %12, %13 : vector<16x128xf32>
    %cst_9 = arith.constant 1.000000e+00 : f32
    %cst_10 = arith.constant -1.000000e+00 : f32
    %15 = vector.broadcast %cst_9 : f32 to vector<16x128xf32>
    %16 = vector.broadcast %cst_10 : f32 to vector<16x128xf32>
    %17 = arith.select %14, %15, %16 : vector<16x128xi1>, vector<16x128xf32>
    %18 = math.absf %12 : vector<16x128xf32>
    %cst_11 = arith.constant 0.327591091 : f32
    %19 = vector.broadcast %cst_11 : f32 to vector<16x128xf32>
    %20 = arith.mulf %19, %18 : vector<16x128xf32>
    %cst_12 = arith.constant 1.000000e+00 : f32
    %21 = vector.broadcast %cst_12 : f32 to vector<16x128xf32>
    %22 = arith.addf %21, %20 : vector<16x128xf32>
    %23 = tpu.reciprocal %22 {approx = true} : vector<16x128xf32> -> vector<16x128xf32>
    %cst_13 = arith.constant 1.06140542 : f32
    %24 = vector.broadcast %cst_13 : f32 to vector<16x128xf32>
    %25 = arith.mulf %24, %23 : vector<16x128xf32>
    %cst_14 = arith.constant -1.45315206 : f32
    %26 = vector.broadcast %cst_14 : f32 to vector<16x128xf32>
    %27 = arith.addf %25, %26 : vector<16x128xf32>
    %28 = arith.mulf %27, %23 : vector<16x128xf32>
    %cst_15 = arith.constant 1.42141378 : f32
    %29 = vector.broadcast %cst_15 : f32 to vector<16x128xf32>
    %30 = arith.addf %28, %29 : vector<16x128xf32>
    %31 = arith.mulf %30, %23 : vector<16x128xf32>
    %cst_16 = arith.constant -0.284496725 : f32
    %32 = vector.broadcast %cst_16 : f32 to vector<16x128xf32>
    %33 = arith.addf %31, %32 : vector<16x128xf32>
    %34 = arith.mulf %33, %23 : vector<16x128xf32>
    %cst_17 = arith.constant 0.254829586 : f32
    %35 = vector.broadcast %cst_17 : f32 to vector<16x128xf32>
    %36 = arith.addf %34, %35 : vector<16x128xf32>
    %37 = arith.mulf %36, %23 : vector<16x128xf32>
    %cst_18 = arith.constant 0.000000e+00 : f32
    %38 = vector.broadcast %cst_18 : f32 to vector<16x128xf32>
    %39 = arith.subf %38, %18 : vector<16x128xf32>
    %40 = arith.mulf %39, %18 : vector<16x128xf32>
    %41 = math.exp %40 : vector<16x128xf32>
    %42 = arith.mulf %37, %41 : vector<16x128xf32>
    %cst_19 = arith.constant 1.000000e+00 : f32
    %43 = vector.broadcast %cst_19 : f32 to vector<16x128xf32>
    %44 = arith.subf %43, %42 : vector<16x128xf32>
    %45 = arith.mulf %17, %44 : vector<16x128xf32>
    %cst_20 = arith.constant 1.000000e+00 : f32
    %46 = vector.broadcast %cst_20 : f32 to vector<16x128xf32>
    %47 = arith.addf %46, %45 : vector<16x128xf32>
    %48 = arith.mulf %10, %47 : vector<16x128xf32>
    %c0_21 = arith.constant 0 : index
    %c0_22 = arith.constant 0 : index
    %49 = vector.load %arg8[%c0_21, %c0_22] : memref<16x128xf32, #tpu.memory_space<vmem>>, vector<16x128xf32>
    %50 = arith.truncf %48 : vector<16x128xf32> to vector<16x128xbf16>
    %c0_23 = arith.constant 0 : index
    %c0_24 = arith.constant 0 : index
    %51 = vector.load %arg5[%c0_23, %c0_24] : memref<128x128xbf16, #tpu.memory_space<vmem>>, vector<128x128xbf16>
    %cst_25 = arith.constant dense<0.000000e+00> : vector<16x128xf32>
    %52 = tpu.matmul %50, %51, %cst_25 {dimension_numbers = #tpu.dot_dimension_numbers<[1], [0], [0], [1], [0, 0, 1, 1], [], []>} : vector<16x128xbf16>, vector<128x128xbf16>, vector<16x128xf32> -> vector<16x128xf32>
    %53 = arith.addf %49, %52 : vector<16x128xf32>
    %c0_26 = arith.constant 0 : index
    %c0_27 = arith.constant 0 : index
    %54 = vector.load %arg8[%c0_26, %c0_27] : memref<16x128xf32, #tpu.memory_space<vmem>>, vector<16x128xf32>
    tpu.vector_store %arg8[%c0_26, %c0_27], %53 {strides = array<i32>} : memref<16x128xf32, #tpu.memory_space<vmem>>, vector<16x128xf32>,
    %c0_i32_28 = arith.constant 0 : i32
    %55 = arith.cmpi eq, %arg1, %c0_i32_28 : i32
    %56 = arith.extui %55 : i1 to i32
    %c0_i32_29 = arith.constant 0 : i32
    %57 = arith.cmpi ne, %56, %c0_i32_29 : i32
    scf.if %57 {
      %c0_30 = arith.constant 0 : index
      %c0_31 = arith.constant 0 : index
      %58 = vector.load %arg8[%c0_30, %c0_31] : memref<16x128xf32, #tpu.memory_space<vmem>>, vector<16x128xf32>
      %c0_32 = arith.constant 0 : index
      %c0_33 = arith.constant 0 : index
      %59 = vector.load %arg6[%c0_32, %c0_33] : memref<1x128xf32, #tpu.memory_space<vmem>>, vector<1x128xf32>
      %60 = vector.broadcast %59 : vector<1x128xf32> to vector<16x128xf32>
      %61 = arith.addf %58, %60 : vector<16x128xf32>
      %c0_34 = arith.constant 0 : index
      %c0_35 = arith.constant 0 : index
      %62 = vector.load %arg7[%c0_34, %c0_35] : memref<16x128xf32, #tpu.memory_space<vmem>>, vector<16x128xf32>
      tpu.vector_store %arg7[%c0_34, %c0_35], %61 {strides = array<i32>} : memref<16x128xf32, #tpu.memory_space<vmem>>, vector<16x128xf32>,
    } else {
    }
    return
  }
  func.func @transform_0(%arg0: i32, %arg1: i32) -> (i32, i32) {
    %c0_i32 = arith.constant 0 : i32
    %c0_i32_0 = arith.constant 0 : i32
    return %arg0, %c0_i32 : i32, i32
  }
  func.func @transform_1(%arg0: i32, %arg1: i32) -> (i32, i32) {
    %c0_i32 = arith.constant 0 : i32
    %c0_i32_0 = arith.constant 0 : i32
    return %c0_i32, %arg1 : i32, i32
  }
  func.func @transform_2(%arg0: i32, %arg1: i32) -> (i32, i32) {
    %c0_i32 = arith.constant 0 : i32
    %c0_i32_0 = arith.constant 0 : i32
    return %c0_i32, %arg1 : i32, i32
  }
  func.func @transform_3(%arg0: i32, %arg1: i32) -> (i32, i32) {
    %c0_i32 = arith.constant 0 : i32
    %c0_i32_0 = arith.constant 0 : i32
    return %arg1, %c0_i32 : i32, i32
  }
  func.func @transform_4(%arg0: i32, %arg1: i32) -> (i32, i32) {
    %c0_i32 = arith.constant 0 : i32
    %c0_i32_0 = arith.constant 0 : i32
    %c0_i32_1 = arith.constant 0 : i32
    return %c0_i32, %c0_i32_0 : i32, i32
  }
  func.func @transform_5(%arg0: i32, %arg1: i32) -> (i32, i32) {
    %c0_i32 = arith.constant 0 : i32
    %c0_i32_0 = arith.constant 0 : i32
    return %arg0, %c0_i32 : i32, i32
  }
}

</mosaic_0001>

<bundles_post_ra>
// kernel: feedforward_forward.1
= control target key start
LH: loop header
LB: loop body
LE: loop exit
PB: predicated region body
PF: predicated region fallthrough
CT: control target
= control target key end

     0   :  { %10 = vsyncpa [#allocation4], 0  ;;  %s572_s0 = inlined_call_operand.vmem [shape: bf16[16,128], index: 0, kind: input, shape index: {}]   ;;  %s573_s1 = inlined_call_operand.hbm [shape: bf16[128,128], index: 1, kind: input, shape index: {}]   ;;  %s574_s2 = inlined_call_operand.vmem [shape: f32[1,128], index: 2, kind: input, shape index: {}]   ;;  %s575_s3 = inlined_call_operand.hbm [shape: bf16[128,128], index: 3, kind: input, shape index: {}]   ;;  %s576_s4 = inlined_call_operand.vmem [shape: f32[1,128], index: 4, kind: input, shape index: {}]   ;;  %s577_s5 = inlined_call_operand.vmem [shape: f32[16,128], index: 5, kind: output, shape index: {}]  }
   0x1   :  { %11 = vsyncpa [#allocation6], 0  ;;  %s514_s18 = smov [#allocation3]  }
   0x2   :  { %s19_s19 = sshll.u32 %s514_s18, 4  ;;  %s20_s19 = int_to_ptr.vmem [resolvable:$true] %s19_s19 }
   0x3   :  { %s478_s20 = scalar_lea.vmem %s20_s19, 1024  ;;  %p483_p1 = scmp.lt.s32.totalorder %s20_s19, %s20_s19 }
   0x4   :  { %p479_p0 = scmp.ne.s32.totalorder %s20_s19, %s478_s20  ;;  %p484_p2 = scmp.lt.s32.totalorder %s478_s20, %s478_s20 }
   0x6   :  { %p485_p3 = por %p484_p2, %p483_p1 }
   0x8   :  { %p486_p4 = pnand %p485_p3, %p479_p0 }
   0xa   :  { %489 = shalt.err (!%p486_p4)
}
   0xb   :  { %s515_s21 = smov 64   ;;  %s516_s22 = smov 4  }
   0xc   :  { %25 = dma.hbm_to_vmem [thread:$0]  %s573_s1, 1024, %s20_s19, [#allocation4], %s515_s21, %s515_s21, %s516_s22  }
   0xd   :  { %s517_s25 = smov [#allocation5]  }
   0xe   :  { %s33_s26 = sshll.u32 %s517_s25, 4  ;;  %s34_s26 = int_to_ptr.vmem [resolvable:$true] %s33_s26 }
   0xf   :  { %s498_s27 = scalar_lea.vmem %s34_s26, 1024  ;;  %p503_p6 = scmp.lt.s32.totalorder %s34_s26, %s34_s26 }
  0x10   :  { %p499_p5 = scmp.ne.s32.totalorder %s34_s26, %s498_s27  ;;  %p504_p7 = scmp.lt.s32.totalorder %s498_s27, %s498_s27 }
  0x12   :  { %p505_p8 = por %p504_p7, %p503_p6 }
  0x14   :  { %p506_p9 = pnand %p505_p8, %p499_p5 }
  0x16   :  { %509 = shalt.err (!%p506_p9)
}
  0x17   :  { %39 = dma.hbm_to_vmem [thread:$0]  %s575_s3, 1024, %s34_s26, [#allocation6], %s515_s21, %s515_s21, %s516_s22  }
  0x18   :  { %510 = dma.done.wait [#allocation4], 1024  }
  0x19   :  { %511 = vsyncadd [#allocation4], 4294966272 }
  0x1a   :  { %512 = dma.done.wait [#allocation6], 1024  }
  0x1b   :  { %513 = vsyncadd [#allocation6], 4294966272  ;;  %v518_v0 = vmov 0.0   ;;  %vm519_vm0 = vmmov 0   ;;  %v445_v1 = vld [vmem:[#allocation3 + $0x38] sm:$0xff]   ;;  %v446_v2 = vld [vmem:[#allocation3 + $0x30] sm:$0xff]  }
  0x1c   :  { %398 = vmatprep.subr.bf16.mxu0 %v518_v0  ;;  %414 = vmatprep.mubr.msk.bf16.mxu0 %vm519_vm0, %v518_v0  ;;  %v447_v3 = vld [vmem:[#allocation3 + $0x28] sm:$0xff]   ;;  %v448_v4 = vld [vmem:[#allocation3 + $0x20] sm:$0xff]   ;;  %v449_v5 = vld [vmem:[#allocation3 + $0x18] sm:$0xff]   ;;  %v520_v63 = vmov -1.0  }
  0x1d   :  { %418 = vmatprep.subr.bf16.mxu1 %v518_v0  ;;  %434 = vmatprep.mubr.msk.bf16.mxu1 %vm519_vm0, %v518_v0  ;;  %v450_v6 = vld [vmem:[#allocation3 + $0x10] sm:$0xff]   ;;  %v451_v7 = vld [vmem:[#allocation3 + $0x8] sm:$0xff]   ;;  %v452_v8 = vld [vmem:[#allocation3] sm:$0xff]  }
  0x1e   :  { %399 = vmatpush3.bf16.msra.mxu0 %v445_v1  ;;  %v453_v9 = vld [vmem:[%s572_s0] sm:$0xff]   ;;  %v454_v10 = vld [vmem:[#allocation5 + $0x38] sm:$0xff]   ;;  %v455_v11 = vld [vmem:[#allocation5 + $0x30] sm:$0xff]  }
  0x1f   :  { %400 = vmatprep.subr.bf16.mxu0 %v518_v0  ;;  %419 = vmatpush3.bf16.msra.mxu1 %v454_v10  ;;  %v456_v12 = vld [vmem:[#allocation5 + $0x28] sm:$0xff]   ;;  %v457_v13 = vld [vmem:[#allocation5 + $0x20] sm:$0xff]   ;;  %v458_v14 = vld [vmem:[#allocation5 + $0x18] sm:$0xff]  }
  0x20   :  { %420 = vmatprep.subr.bf16.mxu1 %v518_v0  ;;  %v459_v15 = vld [vmem:[#allocation5 + $0x10] sm:$0xff]   ;;  %v460_v16 = vld [vmem:[#allocation5 + $0x8] sm:$0xff]   ;;  %v461_v17 = vld [vmem:[#allocation5] sm:$0xff]  }
  0x21   :  { %v361_v18 = vld [vmem:[%s574_s2] ss:$0 sm:$0xff] }
  0x22   :  { %401 = vmatpush3.bf16.msra.mxu0 %v446_v2 }
  0x23   :  { %402 = vmatprep.subr.bf16.mxu0 %v518_v0  ;;  %421 = vmatpush3.bf16.msra.mxu1 %v455_v11 }
  0x24   :  { %422 = vmatprep.subr.bf16.mxu1 %v518_v0 }
  0x26   :  { %403 = vmatpush3.bf16.msra.mxu0 %v447_v3 }
  0x27   :  { %404 = vmatprep.subr.bf16.mxu0 %v518_v0  ;;  %423 = vmatpush3.bf16.msra.mxu1 %v456_v12 }
  0x28   :  { %424 = vmatprep.subr.bf16.mxu1 %v518_v0 }
  0x2a   :  { %405 = vmatpush3.bf16.msra.mxu0 %v448_v4 }
  0x2b   :  { %406 = vmatprep.subr.bf16.mxu0 %v518_v0  ;;  %425 = vmatpush3.bf16.msra.mxu1 %v457_v13  ;;  %v379_v13 = vld [vmem:[%s576_s4] ss:$0 sm:$0xff] }
  0x2c   :  { %426 = vmatprep.subr.bf16.mxu1 %v518_v0 }
  0x2e   :  { %407 = vmatpush3.bf16.msra.mxu0 %v449_v5 }
  0x2f   :  { %408 = vmatprep.subr.bf16.mxu0 %v518_v0  ;;  %427 = vmatpush3.bf16.msra.mxu1 %v458_v14 }
  0x30   :  { %428 = vmatprep.subr.bf16.mxu1 %v518_v0 }
  0x32   :  { %409 = vmatpush3.bf16.msra.mxu0 %v450_v6 }
  0x33   :  { %410 = vmatprep.subr.bf16.mxu0 %v518_v0  ;;  %429 = vmatpush3.bf16.msra.mxu1 %v459_v15 }
  0x34   :  { %430 = vmatprep.subr.bf16.mxu1 %v518_v0 }
  0x36   :  { %411 = vmatpush3.bf16.msra.mxu0 %v451_v7 }
  0x37   :  { %412 = vmatprep.subr.bf16.mxu0 %v518_v0  ;;  %431 = vmatpush3.bf16.msra.mxu1 %v460_v16 }
  0x38   :  { %432 = vmatprep.subr.bf16.mxu1 %v518_v0 }
  0x3a   :  { %413 = vmatpush3.bf16.msra.mxu0 %v452_v8 }
  0x3b   :  { %433 = vmatpush3.bf16.msra.mxu1 %v461_v17 }
  0x3d   :  { %415 = vmatmul.mubr.bf16.vlgmr.msra.gmra.mxu0 %v453_v9 }
  0xfd   :  { %v168_v19 = vpop.f32.mrf.mxu0 }
  0xfe   :  { %v169_v20 = vadd.f32 %v361_v18, %v168_v19 }
  0xff   :  { %v416_v21 = vpop.f32.mrf.mxu0 }
 0x100   :  { %v177_v22 = vmul.f32 0.70710677, %v169_v20  ;;  %v175_v7 = vmul.f32 0.5, %v169_v20 }
 0x101   :  { %v171_v23 = vpop.f32.mrf.mxu0 }
 0x102   :  { %v183_v24 = vand.u32 2147483647, %v177_v22  ;;  %v172_v25 = vadd.f32 %v361_v18, %v171_v23  ;;  %vm179_vm1 = vcmp.ge.f32.partialorder %v177_v22, 0.0 }
 0x103   :  { %v417_v26 = vpop.f32.mrf.mxu0  ;;  %v181_v0 = vsel %vm179_vm1, 1.0, %v520_v63 }
 0x104   :  { %v185_v27 = vmul.f32 0.3275911, %v183_v24  ;;  %v178_v28 = vmul.f32 0.70710677, %v172_v25  ;;  %v209_v33 = vsub.f32 0.0, %v183_v24  ;;  %v176_v8 = vmul.f32 0.5, %v172_v25 }
 0x106   :  { %v187_v29 = vadd.f32 1.0, %v185_v27  ;;  %v184_v30 = vand.u32 2147483647, %v178_v28  ;;  %v211_v34 = vmul.f32 %v209_v33, %v183_v24  ;;  %vm180_vm2 = vcmp.ge.f32.partialorder %v178_v28, 0.0 }
 0x107   :  { %v182_v4 = vsel %vm180_vm2, 1.0, %v520_v63 }
 0x108   :  { %462 = vrcp.f32 %v187_v29  ;;  %v186_v31 = vmul.f32 0.3275911, %v184_v30  ;;  %v210_v35 = vsub.f32 0.0, %v184_v30  ;;  %v213_v38 = vmul.f32 1.442695, %v211_v34 }
 0x10a   :  { %v188_v32 = vadd.f32 1.0, %v186_v31  ;;  %v212_v39 = vmul.f32 %v210_v35, %v184_v30 }
 0x10c   :  { %464 = vrcp.f32 %v188_v32  ;;  %v215_v44 = vmul.f32 1.442695, %v212_v39 }
 0x10d   :  { %466 = vpow2.f32 %v213_v38 }
 0x10e   :  { %468 = vpow2.f32 %v215_v44 }
 0x115   :  { %v463_v36 = vpop.eup %462 }
 0x116   :  { %v191_v37 = vmul.f32 1.0614054, %v463_v36 }
 0x118   :  { %v193_v40 = vadd.f32 -1.4531521, %v191_v37 }
 0x119   :  { %v465_v41 = vpop.eup %464 }
 0x11a   :  { %v195_v42 = vmul.f32 %v463_v36, %v193_v40  ;;  %v192_v43 = vmul.f32 1.0614054, %v465_v41  ;;  %v467_v57 = vpop.eup %466 }
 0x11b   :  { %v469_v62 = vpop.eup %468 }
 0x11c   :  { %v197_v45 = vadd.f32 1.4214138, %v195_v42  ;;  %v194_v46 = vadd.f32 -1.4531521, %v192_v43 }
 0x11e   :  { %v199_v47 = vmul.f32 %v463_v36, %v197_v45  ;;  %v196_v48 = vmul.f32 %v465_v41, %v194_v46 }
 0x120   :  { %v201_v49 = vadd.f32 -0.28449672, %v199_v47  ;;  %v198_v50 = vadd.f32 1.4214138, %v196_v48 }
 0x122   :  { %v203_v51 = vmul.f32 %v463_v36, %v201_v49  ;;  %v200_v52 = vmul.f32 %v465_v41, %v198_v50 }
 0x124   :  { %v205_v53 = vadd.f32 0.2548296, %v203_v51  ;;  %v202_v54 = vadd.f32 -0.28449672, %v200_v52 }
 0x126   :  { %v207_v55 = vmul.f32 %v463_v36, %v205_v53  ;;  %v204_v56 = vmul.f32 %v465_v41, %v202_v54 }
 0x128   :  { %v217_v58 = vmul.f32 %v467_v57, %v207_v55  ;;  %v206_v59 = vadd.f32 0.2548296, %v204_v56 }
 0x12a   :  { %v219_v60 = vsub.f32 1.0, %v217_v58  ;;  %v208_v61 = vmul.f32 %v465_v41, %v206_v59 }
 0x12c   :  { %v221_v1 = vmul.f32 %v219_v60, %v181_v0  ;;  %v218_v2 = vmul.f32 %v469_v62, %v208_v61 }
 0x12e   :  { %v220_v3 = vsub.f32 1.0, %v218_v2  ;;  %v223_v5 = vadd.f32 1.0, %v221_v1 }
 0x130   :  { %v222_v6 = vmul.f32 %v220_v3, %v182_v4  ;;  %v225_v10 = vmul.f32 %v223_v5, %v175_v7 }
 0x132   :  { %v224_v9 = vadd.f32 1.0, %v222_v6 }
 0x134   :  { %v226_v11 = vmul.f32 %v224_v9, %v176_v8 }
 0x136   :  { %v229_v12 = vpack.c.bf16 %v226_v11, %v225_v10 }
 0x138   :  { %435 = vmatmul.mubr.bf16.vlgmr.msra.gmra.mxu1 %v229_v12 }
 0x1f8   :  { %v328_v14 = vpop.f32.mrf.mxu1 }
 0x1f9   :  { %v351_v15 = vadd.f32 %v379_v13, %v328_v14 }
 0x1fa   :  { %v436_v16 = vpop.f32.mrf.mxu1 }
 0x1fb   :  { %353 = vst [vmem:[%s577_s5] sm:$0xff] %v351_v15 }
 0x1fc   :  { %v331_v17 = vpop.f32.mrf.mxu1 }
 0x1fd   :  { %v352_v18 = vadd.f32 %v379_v13, %v331_v17 }
 0x1fe   :  { %v437_v19 = vpop.f32.mrf.mxu1 }
 0x1ff   :  { %354 = vst [vmem:[%s577_s5 + $0x8] sm:$0xff] %v352_v18 }
 0x200   :  { %359 = vsyncpa [#allocation4], 1 }
 0x201   :  { %360 = vsyncpa [#allocation6], 1 }

</bundles_post_ra>
